<compile_context>
chip_gen: v6e
topology: v6e:2x2x1
jax: 0.10.0
libtpu: 0.0.40
codegen_flags: <defaults>
</compile_context>

<pallas_src>
import math

import jax
import jax.numpy as jnp
import numpy as np
from jax import lax
from jax.experimental import pallas as pl
from jax.experimental.pallas import tpu as pltpu


# ----------------------------------------------------------------------------
# Kernel
# ----------------------------------------------------------------------------
def _attention_kernel(x_ref, w1b_ref, b1b_ref, w2b_ref, b2_ref,
                      rexp_ref, ssum_ref, ctx_ref, attn_ref):
    # x_ref:    [bs, T*E]   row block of flattened (B*S) rows, lane-dense
    # w1b_ref:  [T*E, T*H]  block-diagonal kron(I_T, W1)     (resident)
    # b1b_ref:  [1, T*H]    b1 tiled T times                 (resident)
    # w2b_ref:  [T*H, T]    block-column  kron(I_T, w2)      (resident)
    # b2_ref:   [1, 1]      scalar bias in SMEM
    # rexp_ref: [T, T*E]    0/1 expansion  a[:,t] -> lanes t*E..t*E+E-1
    # ssum_ref: [T*E, E]    0/1 group-sum  lanes t*E+e -> e
    # ctx_ref:  [bs, E]     attn_ref: [bs, T]
    x = x_ref[...]                                             # [bs, T*E] f32

    # ---- W1 linear + tanh: one lane-dense MXU matmul, tanh on ~94%-live vregs
    h = jnp.tanh(
        jnp.dot(x, w1b_ref[...], preferred_element_type=jnp.float32)
        + b1b_ref[...]
    )                                                          # [bs, T*H]

    # ---- scores per touchpoint (w2 projection), kept as [bs, T] -------------
    s = (jnp.dot(h, w2b_ref[...], preferred_element_type=jnp.float32)
         + b2_ref[0, 0])                                       # [bs, T]

    # ---- softmax over the T touchpoints (no padding -> no mask needed) ------
    m = jnp.max(s, axis=-1, keepdims=True)
    p = jnp.exp(s - m)
    denom = jnp.sum(p, axis=-1, keepdims=True)
    a = p * pl.reciprocal(denom, approx=False)                 # [bs, T]
    attn_ref[...] = a.astype(attn_ref.dtype)

    # ---- context = attention-weighted sum over touchpoints ------------------
    # a_rep[b, t*E+e] = a[b, t]  (exact: multiply by constant 0/1 matrix),
    # then the per-e group sum is another constant 0/1 matmul.  Everything
    # stays 2-D / lane-dense; no lane<->sublane broadcasts.
    a_rep = jnp.dot(a, rexp_ref[...], preferred_element_type=jnp.float32)
    ctx = jnp.dot(a_rep * x, ssum_ref[...],
                  preferred_element_type=jnp.float32)          # [bs, E]
    ctx_ref[...] = ctx.astype(ctx_ref.dtype)


# ----------------------------------------------------------------------------
# Blocking helpers
# ----------------------------------------------------------------------------
def _round_up(n, m):
    return ((n + m - 1) // m) * m


def _choose_blocking(n_rows, max_block):
    """Pick (padded_rows, block_rows).

    Preference order: (a) no row padding (block divides the row count or is
    the full extent), (b) an even grid length so both v7x TensorCores get
    balanced work, (c) the largest block <= max_block to amortise the
    ~0.35us per-grid-step overhead.
    """
    max_block = max(8, (max_block // 8) * 8)
    if n_rows <= max_block:
        if n_rows % 16 == 0 and n_rows >= 16:
            return n_rows, n_rows // 2           # even 2-step grid, no padding
        return n_rows, n_rows                    # single full-extent block, no padding
    best = None
    for blk in range(max_block, max_block // 2 - 1, -8):
        if blk >= 8 and n_rows % blk == 0:
            if (n_rows // blk) % 2 == 0:
                return n_rows, blk               # even grid, no padding
            if best is None:
                best = (n_rows, blk)             # odd grid, still no padding
    if best is not None:
        return best
    # Rare fallback (awkward row counts): pad with < one block of zero rows.
    return _round_up(n_rows, max_block), max_block


# ----------------------------------------------------------------------------
# Wrapper
# ----------------------------------------------------------------------------
def attention_forward(x, w1, b1, w2, b2, *, max_block_bs=1024):
    """x: [B, S, T, E] float32. Returns (ctx [B,S,1,E], attn [B,S,1,T]).

    w1 is stored transposed ([E, 2E]) so the kernel computes x @ W1; w2 is
    [2E, 1].  max_block_bs=1024 + 48 MiB scoped VMEM is safe on v5e/v6e/v7x;
    on 128-MiB parts (v5e/v6e) both can be raised further.
    """
    B, S, T, E = x.shape
    H = w1.shape[1]                      # 2E
    BS = B * S
    TE, TH = T * E, T * H

    BSp, block_bs = _choose_blocking(BS, max_block_bs)
    grid_len = BSp // block_bs

    f32 = jnp.float32
    xf = x.reshape(BS, TE)               # free metadata reshape (contiguous dims)
    if BSp != BS:
        # Fallback only; zero rows are provably harmless and sliced off below.
        xf = jnp.pad(xf, ((0, BSp - BS), (0, 0)))

    w1_f = w1.astype(f32)
    w2_f = w2.reshape(H, 1).astype(f32)
    eye_t = jnp.eye(T, dtype=f32)
    w1_big = jnp.kron(eye_t, w1_f)                               # [TE, TH]
    w2_big = jnp.kron(eye_t, w2_f)                               # [TH, T]
    b1_big = jnp.tile(b1.reshape(1, H).astype(f32), (1, T))      # [1, TH]
    r_exp = jnp.kron(eye_t, jnp.ones((1, E), f32))               # [T, TE]
    s_sum = jnp.kron(jnp.ones((T, 1), f32), jnp.eye(E, dtype=f32))  # [TE, E]
    b2_2d = b2.reshape(1, 1).astype(f32)                         # SMEM scalar

    cost = pl.CostEstimate(
        flops=int(2 * BS * T * (E * H + H + E)),
        transcendentals=int(BS * T * (H + 1)),
        bytes_accessed=int(4 * (BS * TE + BS * (E + T)
                                + TE * TH + TH * T + T * TE + TE * E + TH + 1)),
    )

    ctx, attn = pl.pallas_call(
        _attention_kernel,
        out_shape=(
            jax.ShapeDtypeStruct((BSp, E), f32),
            jax.ShapeDtypeStruct((BSp, T), f32),
        ),
        grid_spec=pltpu.PrefetchScalarGridSpec(
            num_scalar_prefetch=0,
            grid=(grid_len,),
            in_specs=[
                pl.BlockSpec((block_bs, TE), lambda i: (i, 0)),      # x rows (streamed)
                pl.BlockSpec((TE, TH), lambda i: (0, 0)),            # W1 block-diag (resident)
                pl.BlockSpec((1, TH), lambda i: (0, 0)),             # b1 tiled (resident)
                pl.BlockSpec((TH, T), lambda i: (0, 0)),             # w2 block-col (resident)
                pl.BlockSpec(memory_space=pltpu.MemorySpace.SMEM),   # b2 scalar
                pl.BlockSpec((T, TE), lambda i: (0, 0)),             # expansion 0/1 (resident)
                pl.BlockSpec((TE, E), lambda i: (0, 0)),             # group-sum 0/1 (resident)
            ],
            out_specs=[
                pl.BlockSpec((block_bs, E), lambda i: (i, 0)),
                pl.BlockSpec((block_bs, T), lambda i: (i, 0)),
            ],
        ),
        compiler_params=pltpu.CompilerParams(
            dimension_semantics=("parallel",),
            vmem_limit_bytes=48 * 1024 * 1024,   # <= v7x 64 MiB physical; raise on v5e/v6e
        ),
        cost_estimate=cost,
    )(xf, w1_big, b1_big, w2_big, b2_2d, r_exp, s_sum)

    ctx = ctx[:BS].reshape(B, S, 1, E)
    attn = attn[:BS].reshape(B, S, 1, T)
    return ctx, attn


# ----------------------------------------------------------------------------
# Parameter init (matches the PyTorch module) and pure-JAX reference
# ----------------------------------------------------------------------------
def init_params(embedding_dim, key):
    """w1: Linear(E, 2E) xavier_uniform weight, default-uniform bias.
       w2: Linear(2E, 1) xavier_uniform weight, default-uniform bias.
       Weights stored transposed (so the kernel computes x @ W)."""
    E = embedding_dim
    H = 2 * E
    k1, k2, k3, k4 = jax.random.split(key, 4)

    bound1 = math.sqrt(6.0 / (E + H))                    # xavier_uniform for [H, E]
    w1 = jax.random.uniform(k1, (E, H), jnp.float32, -bound1, bound1)
    bb1 = 1.0 / math.sqrt(E)                             # torch Linear default bias init
    b1 = jax.random.uniform(k2, (H,), jnp.float32, -bb1, bb1)

    bound2 = math.sqrt(6.0 / (H + 1))                    # xavier_uniform for [1, H]
    w2 = jax.random.uniform(k3, (H, 1), jnp.float32, -bound2, bound2)
    bb2 = 1.0 / math.sqrt(H)
    b2 = jax.random.uniform(k4, (1,), jnp.float32, -bb2, bb2)
    return w1, b1, w2, b2


def reference_forward(x, w1, b1, w2, b2):
    """Pure-JAX reference mirroring the PyTorch forward (f32-exact contractions)."""
    hp = lax.Precision.HIGHEST
    h = jnp.tanh(jnp.einsum("bste,eh->bsth", x, w1, precision=hp) + b1)
    s = jnp.einsum("bsth,ho->bsto", h, w2, precision=hp) + b2      # [B,S,T,1]
    a = jax.nn.softmax(s, axis=2)                                  # softmax over touchpoints
    attn = jnp.swapaxes(a, 2, 3)                                   # [B,S,1,T]
    ctx = jnp.einsum("bsut,bste->bsue", attn, x, precision=hp)     # [B,S,1,E]
    return ctx, attn


if __name__ == "__main__":
    key = jax.random.PRNGKey(0)

    # Small shapes consistent with the module: touchpoints=20, embedding_dim=12.
    # First case: rows divide evenly (even 2-step grid, zero padding).
    # Second case: 9 rows -> single full-extent block, zero padding, no masking.
    for (B, S, T, E) in ((2, 8, 20, 12), (3, 3, 20, 12)):
        k_x, k_p, key = jax.random.split(key, 3)
        x = jax.random.normal(k_x, (B, S, T, E), dtype=jnp.float32)
        w1, b1, w2, b2 = init_params(E, k_p)

        ctx, attn = attention_forward(x, w1, b1, w2, b2)
        jax.block_until_ready((ctx, attn))

        ctx_ref, attn_ref = reference_forward(x, w1, b1, w2, b2)
        assert ctx.shape == (B, S, 1, E) and attn.shape == (B, S, 1, T)
        np.testing.assert_allclose(np.asarray(ctx), np.asarray(ctx_ref),
                                   rtol=1e-5, atol=1e-5)
        np.testing.assert_allclose(np.asarray(attn), np.asarray(attn_ref),
                                   rtol=1e-5, atol=1e-5)

    print("KERNEL_OK")
</pallas_src>

<mosaic_0001>
module attributes {stable_mosaic.version = 11 : i64} {
  func.func @_attention_kernel(%arg0: i32, %arg1: memref<8x240xf32, #tpu.memory_space<vmem>>, %arg2: memref<240x480xf32, #tpu.memory_space<vmem>>, %arg3: memref<1x480xf32, #tpu.memory_space<vmem>>, %arg4: memref<480x20xf32, #tpu.memory_space<vmem>>, %arg5: memref<1x1xf32, #tpu.memory_space<smem>>, %arg6: memref<20x240xf32, #tpu.memory_space<vmem>>, %arg7: memref<240x12xf32, #tpu.memory_space<vmem>>, %arg8: memref<8x12xf32, #tpu.memory_space<vmem>>, %arg9: memref<8x20xf32, #tpu.memory_space<vmem>>) attributes {dimension_semantics = [#tpu.dimension_semantics<parallel>], iteration_bounds = array<i64: 2>, scalar_prefetch = 0 : i64, scratch_operands = 0 : i64, tpu.core_type = #tpu.core_type<tc>, window_params = [{transform_indices = @transform_0, window_bounds = array<i64: 8, 240>}, {pipeline_mode = #tpu.pipeline_mode<synchronous>, transform_indices = @transform_1, window_bounds = array<i64: 240, 480>}, {pipeline_mode = #tpu.pipeline_mode<synchronous>, transform_indices = @transform_2, window_bounds = array<i64: 1, 480>}, {pipeline_mode = #tpu.pipeline_mode<synchronous>, transform_indices = @transform_3, window_bounds = array<i64: 480, 20>}, {transform_indices = @transform_4, window_bounds = array<i64: 1, 1>}, {pipeline_mode = #tpu.pipeline_mode<synchronous>, transform_indices = @transform_5, window_bounds = array<i64: 20, 240>}, {pipeline_mode = #tpu.pipeline_mode<synchronous>, transform_indices = @transform_6, window_bounds = array<i64: 240, 12>}, {transform_indices = @transform_7, window_bounds = array<i64: 8, 12>}, {transform_indices = @transform_8, window_bounds = array<i64: 8, 20>}]} {
    %c0 = arith.constant 0 : index
    %c0_0 = arith.constant 0 : index
    %0 = vector.load %arg1[%c0, %c0_0] : memref<8x240xf32, #tpu.memory_space<vmem>>, vector<8x240xf32>
    %c0_1 = arith.constant 0 : index
    %c0_2 = arith.constant 0 : index
    %1 = vector.load %arg2[%c0_1, %c0_2] : memref<240x480xf32, #tpu.memory_space<vmem>>, vector<240x480xf32>
    %cst = arith.constant dense<0.000000e+00> : vector<8x480xf32>
    %2 = tpu.matmul %0, %1, %cst {dimension_numbers = #tpu.dot_dimension_numbers<[1], [0], [0], [1], [0, 0, 1, 1], [], []>} : vector<8x240xf32>, vector<240x480xf32>, vector<8x480xf32> -> vector<8x480xf32>
    %c0_3 = arith.constant 0 : index
    %c0_4 = arith.constant 0 : index
    %3 = vector.load %arg3[%c0_3, %c0_4] : memref<1x480xf32, #tpu.memory_space<vmem>>, vector<1x480xf32>
    %4 = vector.broadcast %3 : vector<1x480xf32> to vector<8x480xf32>
    %5 = arith.addf %2, %4 : vector<8x480xf32>
    %6 = math.tanh %5 : vector<8x480xf32>
    %c0_5 = arith.constant 0 : index
    %c0_6 = arith.constant 0 : index
    %7 = vector.load %arg4[%c0_5, %c0_6] : memref<480x20xf32, #tpu.memory_space<vmem>>, vector<480x20xf32>
    %cst_7 = arith.constant dense<0.000000e+00> : vector<8x20xf32>
    %8 = tpu.matmul %6, %7, %cst_7 {dimension_numbers = #tpu.dot_dimension_numbers<[1], [0], [0], [1], [0, 0, 1, 1], [], []>} : vector<8x480xf32>, vector<480x20xf32>, vector<8x20xf32> -> vector<8x20xf32>
    %c0_8 = arith.constant 0 : index
    %c0_9 = arith.constant 0 : index
    %9 = memref.load %arg5[%c0_8, %c0_9] : memref<1x1xf32, #tpu.memory_space<smem>>
    %10 = vector.broadcast %9 : f32 to vector<8x20xf32>
    %11 = arith.addf %8, %10 : vector<8x20xf32>
    %cst_10 = arith.constant dense<0xFF800000> : vector<8xf32>
    %12 = vector.multi_reduction <maximumf>, %11, %cst_10 [1] : vector<8x20xf32> to vector<8xf32>
    %13 = vector.shape_cast %12 : vector<8xf32> to vector<8x1xf32>
    %14 = vector.broadcast %13 : vector<8x1xf32> to vector<8x20xf32>
    %15 = arith.subf %11, %14 : vector<8x20xf32>
    %16 = math.exp %15 : vector<8x20xf32>
    %cst_11 = arith.constant dense<0.000000e+00> : vector<8xf32>
    %17 = vector.multi_reduction <add>, %16, %cst_11 [1] : vector<8x20xf32> to vector<8xf32>
    %18 = vector.shape_cast %17 : vector<8xf32> to vector<8x1xf32>
    %19 = tpu.reciprocal %18 : vector<8x1xf32> -> vector<8x1xf32>
    %20 = vector.broadcast %19 : vector<8x1xf32> to vector<8x20xf32>
    %21 = arith.mulf %16, %20 : vector<8x20xf32>
    %c0_12 = arith.constant 0 : index
    %c0_13 = arith.constant 0 : index
    %22 = vector.load %arg9[%c0_12, %c0_13] : memref<8x20xf32, #tpu.memory_space<vmem>>, vector<8x20xf32>
    tpu.vector_store %arg9[%c0_12, %c0_13], %21 {strides = array<i32>} : memref<8x20xf32, #tpu.memory_space<vmem>>, vector<8x20xf32>,
    %c0_14 = arith.constant 0 : index
    %c0_15 = arith.constant 0 : index
    %23 = vector.load %arg6[%c0_14, %c0_15] : memref<20x240xf32, #tpu.memory_space<vmem>>, vector<20x240xf32>
    %cst_16 = arith.constant dense<0.000000e+00> : vector<8x240xf32>
    %24 = tpu.matmul %21, %23, %cst_16 {dimension_numbers = #tpu.dot_dimension_numbers<[1], [0], [0], [1], [0, 0, 1, 1], [], []>} : vector<8x20xf32>, vector<20x240xf32>, vector<8x240xf32> -> vector<8x240xf32>
    %25 = arith.mulf %24, %0 : vector<8x240xf32>
    %c0_17 = arith.constant 0 : index
    %c0_18 = arith.constant 0 : index
    %26 = vector.load %arg7[%c0_17, %c0_18] : memref<240x12xf32, #tpu.memory_space<vmem>>, vector<240x12xf32>
    %cst_19 = arith.constant dense<0.000000e+00> : vector<8x12xf32>
    %27 = tpu.matmul %25, %26, %cst_19 {dimension_numbers = #tpu.dot_dimension_numbers<[1], [0], [0], [1], [0, 0, 1, 1], [], []>} : vector<8x240xf32>, vector<240x12xf32>, vector<8x12xf32> -> vector<8x12xf32>
    %c0_20 = arith.constant 0 : index
    %c0_21 = arith.constant 0 : index
    %28 = vector.load %arg8[%c0_20, %c0_21] : memref<8x12xf32, #tpu.memory_space<vmem>>, vector<8x12xf32>
    tpu.vector_store %arg8[%c0_20, %c0_21], %27 {strides = array<i32>} : memref<8x12xf32, #tpu.memory_space<vmem>>, vector<8x12xf32>,
    return
  }
  func.func @transform_0(%arg0: i32) -> (i32, i32) {
    %c0_i32 = arith.constant 0 : i32
    %c0_i32_0 = arith.constant 0 : i32
    return %arg0, %c0_i32 : i32, i32
  }
  func.func @transform_1(%arg0: i32) -> (i32, i32) {
    %c0_i32 = arith.constant 0 : i32
    %c0_i32_0 = arith.constant 0 : i32
    %c0_i32_1 = arith.constant 0 : i32
    return %c0_i32, %c0_i32_0 : i32, i32
  }
  func.func @transform_2(%arg0: i32) -> (i32, i32) {
    %c0_i32 = arith.constant 0 : i32
    %c0_i32_0 = arith.constant 0 : i32
    %c0_i32_1 = arith.constant 0 : i32
    return %c0_i32, %c0_i32_0 : i32, i32
  }
  func.func @transform_3(%arg0: i32) -> (i32, i32) {
    %c0_i32 = arith.constant 0 : i32
    %c0_i32_0 = arith.constant 0 : i32
    %c0_i32_1 = arith.constant 0 : i32
    return %c0_i32, %c0_i32_0 : i32, i32
  }
  func.func @transform_4(%arg0: i32) -> (i32, i32) {
    %c0_i32 = arith.constant 0 : i32
    %c0_i32_0 = arith.constant 0 : i32
    %c0_i32_1 = arith.constant 0 : i32
    return %c0_i32, %c0_i32_0 : i32, i32
  }
  func.func @transform_5(%arg0: i32) -> (i32, i32) {
    %c0_i32 = arith.constant 0 : i32
    %c0_i32_0 = arith.constant 0 : i32
    %c0_i32_1 = arith.constant 0 : i32
    return %c0_i32, %c0_i32_0 : i32, i32
  }
  func.func @transform_6(%arg0: i32) -> (i32, i32) {
    %c0_i32 = arith.constant 0 : i32
    %c0_i32_0 = arith.constant 0 : i32
    %c0_i32_1 = arith.constant 0 : i32
    return %c0_i32, %c0_i32_0 : i32, i32
  }
  func.func @transform_7(%arg0: i32) -> (i32, i32) {
    %c0_i32 = arith.constant 0 : i32
    %c0_i32_0 = arith.constant 0 : i32
    return %arg0, %c0_i32 : i32, i32
  }
  func.func @transform_8(%arg0: i32) -> (i32, i32) {
    %c0_i32 = arith.constant 0 : i32
    %c0_i32_0 = arith.constant 0 : i32
    return %arg0, %c0_i32 : i32, i32
  }
}

</mosaic_0001>

<bundles_post_ra>
// kernel: tpu_custom_call.1
= control target key start
LH: loop header
LB: loop body
LE: loop exit
PB: predicated region body
PF: predicated region fallthrough
CT: control target
= control target key end

     0   :  { %s2013_s0 = inlined_call_operand.vmem [shape: f32[16,240], index: 0, kind: input, shape index: {}]   ;;  %s2014_s1 = inlined_call_operand.hbm [shape: f32[240,480], index: 1, kind: input, shape index: {}]   ;;  %s2015_s2 = inlined_call_operand.vmem [shape: f32[1,480], index: 2, kind: input, shape index: {}]   ;;  %s2016_s3 = inlined_call_operand.vmem [shape: f32[480,20], index: 3, kind: input, shape index: {}]   ;;  %s2017_s4 = inlined_call_operand.<no memory space> [shape: f32[1,1], index: 4, kind: input, shape index: {}]   ;;  %s2018_s5 = inlined_call_operand.vmem [shape: f32[20,240], index: 5, kind: input, shape index: {}]   ;;  %s2019_s6 = inlined_call_operand.vmem [shape: f32[240,12], index: 6, kind: input, shape index: {}]   ;;  %s2020_s7 = inlined_call_operand.hbm [shape: f32[16,12], index: 7, kind: output, shape index: {0}]   ;;  %s2021_s8 = inlined_call_operand.hbm [shape: f32[16,20], index: 8, kind: output, shape index: {1}]  }
   0x1   :  { %14 = sst [smem:[#allocation2]] %s2017_s4 }
   0x2   :  { %15 = vsyncpa [#allocation4], 0 }
   0x3   :  { %16 = vsyncpa [#allocation5], 0 }
   0x4   :  { %18 = vsyncpa [#allocation5 + $0x1], 0 }
   0x5   :  { %19 = vsyncpa [#allocation8], 0 }
   0x6   :  { %21 = vsyncpa [#allocation8 + $0x1], 0  ;;  %s1478_s29 = smov 0   ;;  %s1480_s30 = smov 0  }
   0x7   :  { %s1482_s9 = smov 0   ;;  %s1484_s10 = smov 0  }
   0x8 LB: > { %s1499_s4 = sadd.s32 4294967295, %s1422_s10   ;;  %s1173_s11 = sadd.s32 4294967294, %s1422_s10   ;;  %s1422_s10 = sphi %s1484_s10, %s2033_s10   ;;  %s1418_s9 = sphi %s1482_s9, %s2032_s9   ;;  %s1414_s30 = sphi %s1480_s30, %s2031_s30   ;;  %s1410_s29 = sphi %s1478_s29, %s2030_s29  }
   0x9   : > { %s1503_s12 = sadd.s32 1, %s1422_s10   ;;  %s186_s13 = sadd.s32 1, %s1418_s9 }
   0xa   : > { %s183_s14 = ssub.s32 %s1422_s10, %s1503_s12  ;;  %p196_p0 = scmp.ne.s32.totalorder %s1418_s9, %s1414_s30 }
   0xb   : > { %p184_p1 = scmp.eq.s32.totalorder %s183_s14, 0  ;;  %p197_p2 = scmp.eq.s32.totalorder %s1499_s4, 1 }
   0xc   : > { %p202_p3 = scmp.ne.s32.totalorder %s1414_s30, %s1410_s29  ;;  %p203_p4 = scmp.eq.s32.totalorder %s1173_s11, 1 }
   0xd   : > { %s1514_s15 = scalar_select %p184_p1, %s1418_s9, %s186_s13  }
   0xe   : > { %p1516_p5 = por %p197_p2, %p196_p0  ;;  %p1520_p6 = por %p203_p4, %p202_p3 }
   0xf   : > { %p1174_p7 = scmp.ge.s32.totalorder %s1422_s10, 1  ;;  %p236_p8 = scmp.lt.s32.totalorder %s1422_s10, 3 }
  0x10   : > { %s2025_s17 = scalar_select %p1520_p6, 1, 0 }
  0x11   : > { %p1251_p9 = scmp.eq.s32.totalorder %s1499_s4, 0  ;;  %p1527_p10 = pnand %p1174_p7, %p236_p8 }
  0x12   : > { %s1424_s19 = smov [#allocation3]  }
  0x13   : > { %s248_s20 = sshll.u32 %s1424_s19, 4  ;;  %p1240_p11 = pneg %p1527_p10  ;;  %s249_s20 = int_to_ptr.vmem [resolvable:$true] %s248_s20 }
  0x14   : > { %s1313_s21 = scalar_lea.vmem %s249_s20, 15360  ;;  %p1321_p3 = scmp.lt.s32.totalorder %s249_s20, %s249_s20 }
  0x15   : > { %p1241_p12 = pnand %p1251_p9, %p1240_p11  ;;  %p1314_p0 = scmp.ne.s32.totalorder %s249_s20, %s1313_s21 }
  0x16   : > { %p1322_p4 = scmp.lt.s32.totalorder %s1313_s21, %s1313_s21 }
  0x17   : > { %p1304_p13 = pneg %p1241_p12 }
  0x18   : > { %p1323_p6 = por %p1322_p4, %p1321_p3 }
  0x19   : > { %p1316_p1 = pnand %p1314_p0, %p1304_p13 }
  0x1b   : > { %p1317_p2 = pneg %p1316_p1 }
  0x1d   : > { %p1324_p7 = pnand %p1323_p6, %p1317_p2 }
  0x1f   : > { %1327 = shalt.err (!%p1324_p7)
}
  0x20   : > { %s1425_s22 = smov 512   ;;  %s1426_s23 = smov 32  }
  0x21   : > { %1243 = dma.hbm_to_vmem [thread:$0]  (!%p1241_p12), %s2014_s1, 15360, %s249_s20, [#allocation4], %s1425_s22, %s1425_s22, %s1426_s23  }
  0x22   : > { %287 = sbr.rel (%p1527_p10) target bundleno = 1281 (0x501), region = 48 }
  0x27   : > { %1397 = dma.done.wait (%p1251_p9), [#allocation4], 15360  }
  0x28   : > { %1399 = vsyncadd (%p1251_p9), [#allocation4], 4294951936  ;;  %v394_v0 = vld [vmem:[#allocation3 + $0x1e8] sm:$0xff]  ;;  %v393_v1 = vld [vmem:[#allocation3 + $0x1e0] sm:$0xff]  ;;  %p326_p6 = scmp.lt.s32.totalorder %s1499_s4, 1  ;;  %vm475_vm0 = vcmask 916480  }
  0x29   : > { %v390_v2 = vld [vmem:[#allocation3 + $0x1c8] sm:$0xff]  ;;  %479 = vmatprep.subr.mxu0 %v394_v0  ;;  %v389_v3 = vld [vmem:[#allocation3 + $0x1c0] sm:$0xff]  ;;  %v396_v21 = vld [vmem:[#allocation3 + $0x1f8] sm:$0xff]  ;;  %vm687_vm1 = vcmask 785408   ;;  %vm831_vm2 = vcmask 162816   ;;  %vm853_vm3 = vcmask 1043456  }
  0x2a   : > { %480 = vmatpush1.msra.mxu0 %v393_v1  ;;  %v386_v4 = vld [vmem:[#allocation3 + $0x1a8] sm:$0xff]  ;;  %v385_v5 = vld [vmem:[#allocation3 + $0x1a0] sm:$0xff]  ;;  %s327_s26 = scalar_select %p326_p6, %s1499_s4, 1  ;;  %v395_v22 = vld [vmem:[#allocation3 + $0x1f0] sm:$0xff]  ;;  %550 = vmatprep.subr.mxu1 %v396_v21 }
  0x2b   : > { %481 = vmatprep.subr.mxu0 %v390_v2  ;;  %v382_v6 = vld [vmem:[#allocation3 + $0x188] sm:$0xff]  ;;  %v381_v7 = vld [vmem:[#allocation3 + $0x180] sm:$0xff]  ;;  %v392_v24 = vld [vmem:[#allocation3 + $0x1d8] sm:$0xff]  ;;  %551 = vmatpush1.msra.mxu1 %v395_v22  ;;  %s2022_s20 = sshll.u32 %s1499_s4, 7  ;;  %s1428_s11 = smov [#allocation7]  }
  0x2c   : > { %482 = vmatpush1.msra.mxu0 %v389_v3  ;;  %v378_v8 = vld [vmem:[#allocation3 + $0x168] sm:$0xff]  ;;  %v377_v9 = vld [vmem:[#allocation3 + $0x160] sm:$0xff]  ;;  %s1196_s27 = sshll.u32 %s327_s26, 4  ;;  %v391_v26 = vld [vmem:[#allocation3 + $0x1d0] sm:$0xff]  ;;  %552 = vmatprep.subr.mxu1 %v392_v24  ;;  %s1812_s26 = sand.u32 1, %s1414_s30  }
  0x2d   : > { %483 = vmatprep.subr.mxu0 %v386_v4  ;;  %v374_v10 = vld [vmem:[#allocation3 + $0x148] sm:$0xff]  ;;  %v373_v11 = vld [vmem:[#allocation3 + $0x140] sm:$0xff]  ;;  %s1549_s13 = scalar_lea.vmem %s2013_s0, %s1196_s27  ;;  %v388_v27 = vld [vmem:[#allocation3 + $0x1b8] sm:$0xff]  ;;  %553 = vmatpush1.msra.mxu1 %v391_v26  ;;  %s685_s27 = sld [smem:[#allocation2]] }
  0x2e   : > { %484 = vmatpush1.msra.mxu0 %v385_v5  ;;  %v370_v12 = vld [vmem:[#allocation3 + $0x128] sm:$0xff]  ;;  %v369_v13 = vld [vmem:[#allocation3 + $0x120] sm:$0xff]  ;;  %v387_v29 = vld [vmem:[#allocation3 + $0x1b0] sm:$0xff]  ;;  %554 = vmatprep.subr.mxu1 %v388_v27  ;;  %s1068_s23 = scalar_lea.hbm %s2021_s8, %s2022_s20  ;;  %s1044_s25 = scalar_lea.sflag [#allocation8], %s1812_s26 }
  0x2f   : > { %485 = vmatprep.subr.mxu0 %v382_v6  ;;  %v366_v14 = vld [vmem:[#allocation3 + $0x108] sm:$0xff]  ;;  %v365_v15 = vld [vmem:[#allocation3 + $0x100] sm:$0xff]  ;;  %v384_v33 = vld [vmem:[#allocation3 + $0x198] sm:$0xff]  ;;  %555 = vmatpush1.msra.mxu1 %v387_v29 }
  0x30   : > { %486 = vmatpush1.msra.mxu0 %v381_v7  ;;  %v362_v16 = vld [vmem:[#allocation3 + $0xe8] sm:$0xff]  ;;  %v361_v17 = vld [vmem:[#allocation3 + $0xe0] sm:$0xff]  ;;  %v383_v35 = vld [vmem:[#allocation3 + $0x190] sm:$0xff]  ;;  %556 = vmatprep.subr.mxu1 %v384_v33 }
  0x31   : > { %487 = vmatprep.subr.mxu0 %v378_v8  ;;  %v358_v18 = vld [vmem:[#allocation3 + $0xc8] sm:$0xff]  ;;  %v357_v19 = vld [vmem:[#allocation3 + $0xc0] sm:$0xff]  ;;  %v380_v37 = vld [vmem:[#allocation3 + $0x178] sm:$0xff]  ;;  %557 = vmatpush1.msra.mxu1 %v383_v35 }
  0x32   : > { %488 = vmatpush1.msra.mxu0 %v377_v9  ;;  %v354_v20 = vld [vmem:[#allocation3 + $0xa8] sm:$0xff]  ;;  %v353_v23 = vld [vmem:[#allocation3 + $0xa0] sm:$0xff]  ;;  %v379_v39 = vld [vmem:[#allocation3 + $0x170] sm:$0xff]  ;;  %558 = vmatprep.subr.mxu1 %v380_v37 }
  0x33   : > { %489 = vmatprep.subr.mxu0 %v374_v10  ;;  %v350_v25 = vld [vmem:[#allocation3 + $0x88] sm:$0xff]  ;;  %v349_v28 = vld [vmem:[#allocation3 + $0x80] sm:$0xff]  ;;  %v376_v41 = vld [vmem:[#allocation3 + $0x158] sm:$0xff]  ;;  %559 = vmatpush1.msra.mxu1 %v379_v39 }
  0x34   : > { %490 = vmatpush1.msra.mxu0 %v373_v11  ;;  %v346_v30 = vld [vmem:[#allocation3 + $0x68] sm:$0xff]  ;;  %v345_v32 = vld [vmem:[#allocation3 + $0x60] sm:$0xff]  ;;  %v375_v43 = vld [vmem:[#allocation3 + $0x150] sm:$0xff]  ;;  %560 = vmatprep.subr.mxu1 %v376_v41 }
  0x35   : > { %491 = vmatprep.subr.mxu0 %v370_v12  ;;  %v1552_v31 = vld [vmem:[%s1549_s13 + $0x8] sm:$0xff]  ;;  %v341_v36 = vld [vmem:[#allocation3 + $0x40] sm:$0xff]  ;;  %v372_v45 = vld [vmem:[#allocation3 + $0x138] sm:$0xff]  ;;  %561 = vmatpush1.msra.mxu1 %v375_v43 }
  0x36   : > { %492 = vmatpush1.msra.mxu0 %v369_v13  ;;  %v342_v34 = vld [vmem:[#allocation3 + $0x48] sm:$0xff]  ;;  %1183 = vmatprep.mubr.msk.f32.mxu0 %vm475_vm0, %v1552_v31  ;;  %v337_v40 = vld [vmem:[#allocation3 + $0x20] sm:$0xff]  ;;  %v371_v47 = vld [vmem:[#allocation3 + $0x130] sm:$0xff] }
  0x37   : > { %493 = vmatprep.subr.mxu0 %v366_v14  ;;  %v338_v38 = vld [vmem:[#allocation3 + $0x28] sm:$0xff]  ;;  %v333_v44 = vld [vmem:[#allocation3] sm:$0xff]  ;;  %v368_v49 = vld [vmem:[#allocation3 + $0x118] sm:$0xff]  ;;  %562 = vmatprep.subr.mxu1 %v372_v45 }
  0x38   : > { %494 = vmatpush1.msra.mxu0 %v365_v15  ;;  %v334_v42 = vld [vmem:[#allocation3 + $0x8] sm:$0xff]  ;;  %v449_v48 = vld [vmem:[#allocation3 + $0x3a0] sm:$0xff]  ;;  %v367_v51 = vld [vmem:[#allocation3 + $0x110] sm:$0xff]  ;;  %563 = vmatpush1.msra.mxu1 %v371_v47 }
  0x39   : > { %495 = vmatprep.subr.mxu0 %v362_v16  ;;  %v450_v46 = vld [vmem:[#allocation3 + $0x3a8] sm:$0xff]  ;;  %v445_v52 = vld [vmem:[#allocation3 + $0x380] sm:$0xff]  ;;  %v364_v53 = vld [vmem:[#allocation3 + $0xf8] sm:$0xff]  ;;  %564 = vmatprep.subr.mxu1 %v368_v49 }
  0x3a   : > { %496 = vmatpush1.msra.mxu0 %v361_v17  ;;  %v446_v50 = vld [vmem:[#allocation3 + $0x388] sm:$0xff]  ;;  %v363_v55 = vld [vmem:[#allocation3 + $0xf0] sm:$0xff]  ;;  %v441_v56 = vld [vmem:[#allocation3 + $0x360] sm:$0xff]  ;;  %565 = vmatpush1.msra.mxu1 %v367_v51 }
  0x3b   : > { %497 = vmatprep.subr.mxu0 %v358_v18  ;;  %v442_v54 = vld [vmem:[#allocation3 + $0x368] sm:$0xff]  ;;  %v360_v57 = vld [vmem:[#allocation3 + $0xd8] sm:$0xff]  ;;  %566 = vmatprep.subr.mxu1 %v364_v53  ;;  %v359_v59 = vld [vmem:[#allocation3 + $0xd0] sm:$0xff] }
  0x3c   : > { %498 = vmatpush1.msra.mxu0 %v357_v19  ;;  %v438_v58 = vld [vmem:[#allocation3 + $0x348] sm:$0xff]  ;;  %v437_v60 = vld [vmem:[#allocation3 + $0x340] sm:$0xff]  ;;  %567 = vmatpush1.msra.mxu1 %v363_v55  ;;  %v356_v61 = vld [vmem:[#allocation3 + $0xb8] sm:$0xff] }
  0x3d   : > { %499 = vmatprep.subr.mxu0 %v354_v20  ;;  %v434_v62 = vld [vmem:[#allocation3 + $0x328] sm:$0xff]  ;;  %568 = vmatprep.subr.mxu1 %v360_v57  ;;  %v355_v63 = vld [vmem:[#allocation3 + $0xb0] sm:$0xff]  ;;  %v433_v0 = vld [vmem:[#allocation3 + $0x320] sm:$0xff] }
  0x3e   : > { %500 = vmatpush1.msra.mxu0 %v353_v23  ;;  %569 = vmatpush1.msra.mxu1 %v359_v59  ;;  %v352_v1 = vld [vmem:[#allocation3 + $0x98] sm:$0xff]  ;;  %v430_v2 = vld [vmem:[#allocation3 + $0x308] sm:$0xff]  ;;  %v351_v3 = vld [vmem:[#allocation3 + $0x90] sm:$0xff] }
  0x3f   : > { %501 = vmatprep.subr.mxu0 %v350_v25  ;;  %570 = vmatprep.subr.mxu1 %v356_v61  ;;  %v429_v4 = vld [vmem:[#allocation3 + $0x300] sm:$0xff]  ;;  %v348_v5 = vld [vmem:[#allocation3 + $0x78] sm:$0xff]  ;;  %v426_v6 = vld [vmem:[#allocation3 + $0x2e8] sm:$0xff] }
  0x40   : > { %502 = vmatpush1.msra.mxu0 %v349_v28  ;;  %571 = vmatpush1.msra.mxu1 %v355_v63  ;;  %v347_v7 = vld [vmem:[#allocation3 + $0x70] sm:$0xff]  ;;  %v425_v8 = vld [vmem:[#allocation3 + $0x2e0] sm:$0xff]  ;;  %v344_v9 = vld [vmem:[#allocation3 + $0x58] sm:$0xff] }
  0x41   : > { %503 = vmatprep.subr.mxu0 %v346_v30  ;;  %572 = vmatprep.subr.mxu1 %v352_v1  ;;  %v422_v10 = vld [vmem:[#allocation3 + $0x2c8] sm:$0xff]  ;;  %v343_v11 = vld [vmem:[#allocation3 + $0x50] sm:$0xff]  ;;  %v421_v12 = vld [vmem:[#allocation3 + $0x2c0] sm:$0xff] }
  0x42   : > { %504 = vmatpush1.msra.mxu0 %v345_v32  ;;  %573 = vmatpush1.msra.mxu1 %v351_v3  ;;  %v340_v13 = vld [vmem:[#allocation3 + $0x38] sm:$0xff]  ;;  %v418_v14 = vld [vmem:[#allocation3 + $0x2a8] sm:$0xff]  ;;  %v339_v15 = vld [vmem:[#allocation3 + $0x30] sm:$0xff] }
  0x43   : > { %505 = vmatprep.subr.mxu0 %v342_v34  ;;  %574 = vmatprep.subr.mxu1 %v348_v5  ;;  %v417_v16 = vld [vmem:[#allocation3 + $0x2a0] sm:$0xff]  ;;  %v336_v17 = vld [vmem:[#allocation3 + $0x18] sm:$0xff]  ;;  %v414_v18 = vld [vmem:[#allocation3 + $0x288] sm:$0xff] }
  0x44   : > { %506 = vmatpush1.msra.mxu0 %v341_v36  ;;  %575 = vmatpush1.msra.mxu1 %v347_v7  ;;  %v335_v19 = vld [vmem:[#allocation3 + $0x10] sm:$0xff]  ;;  %v413_v20 = vld [vmem:[#allocation3 + $0x280] sm:$0xff]  ;;  %v452_v21 = vld [vmem:[#allocation3 + $0x3b8] sm:$0xff] }
  0x45   : > { %507 = vmatprep.subr.mxu0 %v338_v38  ;;  %576 = vmatprep.subr.mxu1 %v344_v9  ;;  %v410_v22 = vld [vmem:[#allocation3 + $0x268] sm:$0xff]  ;;  %v451_v23 = vld [vmem:[#allocation3 + $0x3b0] sm:$0xff]  ;;  %v409_v24 = vld [vmem:[#allocation3 + $0x260] sm:$0xff] }
  0x46   : > { %508 = vmatpush1.msra.mxu0 %v337_v40  ;;  %577 = vmatpush1.msra.mxu1 %v343_v11  ;;  %v448_v25 = vld [vmem:[#allocation3 + $0x398] sm:$0xff]  ;;  %v406_v26 = vld [vmem:[#allocation3 + $0x248] sm:$0xff]  ;;  %v447_v27 = vld [vmem:[#allocation3 + $0x390] sm:$0xff] }
  0x47   : > { %509 = vmatprep.subr.mxu0 %v334_v42  ;;  %578 = vmatprep.subr.mxu1 %v340_v13  ;;  %v405_v28 = vld [vmem:[#allocation3 + $0x240] sm:$0xff]  ;;  %v444_v29 = vld [vmem:[#allocation3 + $0x378] sm:$0xff]  ;;  %v402_v30 = vld [vmem:[#allocation3 + $0x228] sm:$0xff] }
  0x48   : > { %510 = vmatpush1.msra.mxu0 %v333_v44  ;;  %579 = vmatpush1.msra.mxu1 %v339_v15  ;;  %v443_v32 = vld [vmem:[#allocation3 + $0x370] sm:$0xff]  ;;  %v401_v33 = vld [vmem:[#allocation3 + $0x220] sm:$0xff]  ;;  %v440_v34 = vld [vmem:[#allocation3 + $0x358] sm:$0xff] }
  0x49   : > { %515 = vmatprep.subr.mxu0 %v450_v46  ;;  %580 = vmatprep.subr.mxu1 %v336_v17  ;;  %v398_v35 = vld [vmem:[#allocation3 + $0x208] sm:$0xff]  ;;  %v439_v36 = vld [vmem:[#allocation3 + $0x350] sm:$0xff]  ;;  %v397_v37 = vld [vmem:[#allocation3 + $0x200] sm:$0xff] }
  0x4a   : > { %516 = vmatpush2.msra.mxu0 %v449_v48  ;;  %581 = vmatpush1.msra.mxu1 %v335_v19  ;;  %v436_v38 = vld [vmem:[#allocation3 + $0x338] sm:$0xff]  ;;  %v1557_v39 = vld [vmem:[%s1549_s13] sm:$0xff]  ;;  %v435_v40 = vld [vmem:[#allocation3 + $0x330] sm:$0xff]  ;;  %s1332_s13 = sshll.u32 %s1428_s11, 4  ;;  %s1333_s13 = int_to_ptr.vmem [resolvable:$false] %s1332_s13 }
  0x4b   : > { %517 = vmatprep.subr.mxu0 %v446_v50  ;;  %586 = vmatprep.subr.mxu1 %v452_v21  ;;  %v432_v41 = vld [vmem:[#allocation3 + $0x318] sm:$0xff]  ;;  %v431_v42 = vld [vmem:[#allocation3 + $0x310] sm:$0xff]  ;;  %v654_v63 = vld [vmem:[%s2016_s3 + $0xe8] sm:$0xff]  ;;  %s1334_s14 = scalar_lea.vmem %s1333_s13, 256 }
  0x4c   : > { %518 = vmatpush2.msra.mxu0 %v445_v52  ;;  %587 = vmatpush2.msra.mxu1 %v451_v23  ;;  %v428_v43 = vld [vmem:[#allocation3 + $0x2f8] sm:$0xff]  ;;  %v427_v44 = vld [vmem:[#allocation3 + $0x2f0] sm:$0xff]  ;;  %v653_v1 = vld [vmem:[%s2016_s3 + $0xe0] sm:$0xff] }
  0x4d   : > { %519 = vmatprep.subr.mxu0 %v442_v54  ;;  %588 = vmatprep.subr.mxu1 %v448_v25  ;;  %v424_v45 = vld [vmem:[#allocation3 + $0x2d8] sm:$0xff]  ;;  %v423_v46 = vld [vmem:[#allocation3 + $0x2d0] sm:$0xff]  ;;  %v650_v7 = vld [vmem:[%s2016_s3 + $0xc8] sm:$0xff] }
  0x4e   : > { %520 = vmatpush2.msra.mxu0 %v441_v56  ;;  %589 = vmatpush2.msra.mxu1 %v447_v27  ;;  %v420_v47 = vld [vmem:[#allocation3 + $0x2b8] sm:$0xff]  ;;  %v419_v48 = vld [vmem:[#allocation3 + $0x2b0] sm:$0xff]  ;;  %v649_v9 = vld [vmem:[%s2016_s3 + $0xc0] sm:$0xff]  ;;  %v1427_v27 = vmov 0.0  }
  0x4f   : > { %521 = vmatprep.subr.mxu0 %v438_v58  ;;  %590 = vmatprep.subr.mxu1 %v444_v29  ;;  %v416_v49 = vld [vmem:[#allocation3 + $0x298] sm:$0xff]  ;;  %v415_v50 = vld [vmem:[#allocation3 + $0x290] sm:$0xff]  ;;  %v646_v15 = vld [vmem:[%s2016_s3 + $0xa8] sm:$0xff] }
  0x50   : > { %522 = vmatpush2.msra.mxu0 %v437_v60  ;;  %591 = vmatpush2.msra.mxu1 %v443_v32  ;;  %v412_v51 = vld [vmem:[#allocation3 + $0x278] sm:$0xff]  ;;  %v411_v52 = vld [vmem:[#allocation3 + $0x270] sm:$0xff]  ;;  %v645_v17 = vld [vmem:[%s2016_s3 + $0xa0] sm:$0xff] }
  0x51   : > { %523 = vmatprep.subr.mxu0 %v434_v62  ;;  %592 = vmatprep.subr.mxu1 %v440_v34  ;;  %v408_v53 = vld [vmem:[#allocation3 + $0x258] sm:$0xff]  ;;  %v407_v54 = vld [vmem:[#allocation3 + $0x250] sm:$0xff]  ;;  %v642_v23 = vld [vmem:[%s2016_s3 + $0x88] sm:$0xff] }
  0x52   : > { %524 = vmatpush2.msra.mxu0 %v433_v0  ;;  %593 = vmatpush2.msra.mxu1 %v439_v36  ;;  %v404_v55 = vld [vmem:[#allocation3 + $0x238] sm:$0xff]  ;;  %v403_v56 = vld [vmem:[#allocation3 + $0x230] sm:$0xff]  ;;  %v638_v0 = vld [vmem:[%s2016_s3 + $0x68] sm:$0xff] }
  0x53   : > { %525 = vmatprep.subr.mxu0 %v430_v2  ;;  %594 = vmatprep.subr.mxu1 %v436_v38  ;;  %v400_v57 = vld [vmem:[#allocation3 + $0x218] sm:$0xff]  ;;  %v399_v58 = vld [vmem:[#allocation3 + $0x210] sm:$0xff]  ;;  %v637_v2 = vld [vmem:[%s2016_s3 + $0x60] sm:$0xff] }
  0x54   : > { %526 = vmatpush2.msra.mxu0 %v429_v4  ;;  %595 = vmatpush2.msra.mxu1 %v435_v40  ;;  %v656_v59 = vld [vmem:[%s2016_s3 + $0xf8] sm:$0xff]  ;;  %v655_v61 = vld [vmem:[%s2016_s3 + $0xf0] sm:$0xff]  ;;  %v641_v25 = vld [vmem:[%s2016_s3 + $0x80] sm:$0xff] }
  0x55   : > { %527 = vmatprep.subr.mxu0 %v426_v6  ;;  %596 = vmatprep.subr.mxu1 %v432_v41  ;;  %v640_v60 = vld [vmem:[%s2016_s3 + $0x78] sm:$0xff]  ;;  %v639_v62 = vld [vmem:[%s2016_s3 + $0x70] sm:$0xff]  ;;  %v1667_v32 = vld [vmem:[%s2015_s2] sm:$0xf] }
  0x56   : > { %528 = vmatpush2.msra.mxu0 %v425_v8  ;;  %1184 = vmatprep.mubr.msk.f32.mxu1 %vm475_vm0, %v1552_v31  ;;  %v652_v3 = vld [vmem:[%s2016_s3 + $0xd8] sm:$0xff]  ;;  %v651_v5 = vld [vmem:[%s2016_s3 + $0xd0] sm:$0xff]  ;;  %v634_v8 = vld [vmem:[%s2016_s3 + $0x48] sm:$0xff] }
  0x57   : > { %529 = vmatprep.subr.mxu0 %v422_v10  ;;  %597 = vmatpush2.msra.mxu1 %v431_v42  ;;  %v636_v4 = vld [vmem:[%s2016_s3 + $0x58] sm:$0xff]  ;;  %v635_v6 = vld [vmem:[%s2016_s3 + $0x50] sm:$0xff]  ;;  %v633_v10 = vld [vmem:[%s2016_s3 + $0x40] sm:$0xff] }
  0x58   : > { %530 = vmatpush2.msra.mxu0 %v421_v12  ;;  %598 = vmatprep.subr.mxu1 %v428_v43  ;;  %v648_v11 = vld [vmem:[%s2016_s3 + $0xb8] sm:$0xff]  ;;  %v647_v13 = vld [vmem:[%s2016_s3 + $0xb0] sm:$0xff] }
  0x59   : > { %531 = vmatprep.subr.mxu0 %v418_v14  ;;  %599 = vmatpush2.msra.mxu1 %v427_v44  ;;  %v632_v12 = vld [vmem:[%s2016_s3 + $0x38] sm:$0xff]  ;;  %v631_v14 = vld [vmem:[%s2016_s3 + $0x30] sm:$0xff] }
  0x5a   : > { %532 = vmatpush2.msra.mxu0 %v417_v16  ;;  %600 = vmatprep.subr.mxu1 %v424_v45  ;;  %v630_v16 = vld [vmem:[%s2016_s3 + $0x28] sm:$0xff]  ;;  %v644_v19 = vld [vmem:[%s2016_s3 + $0x98] sm:$0xff]  ;;  %v643_v21 = vld [vmem:[%s2016_s3 + $0x90] sm:$0xff] }
  0x5b   : > { %533 = vmatprep.subr.mxu0 %v414_v18  ;;  %601 = vmatpush2.msra.mxu1 %v423_v46  ;;  %v629_v18 = vld [vmem:[%s2016_s3 + $0x20] sm:$0xff]  ;;  %v672_v43 = vld [vmem:[%s2016_s3 + $0x178] sm:$0xff] }
  0x5c   : > { %534 = vmatpush2.msra.mxu0 %v413_v20  ;;  %602 = vmatprep.subr.mxu1 %v420_v47  ;;  %v628_v20 = vld [vmem:[%s2016_s3 + $0x18] sm:$0xff]  ;;  %v671_v47 = vld [vmem:[%s2016_s3 + $0x170] sm:$0xff] }
  0x5d   : > { %535 = vmatprep.subr.mxu0 %v410_v22  ;;  %603 = vmatpush2.msra.mxu1 %v419_v48  ;;  %v627_v22 = vld [vmem:[%s2016_s3 + $0x10] sm:$0xff] }
  0x5e   : > { %536 = vmatpush2.msra.mxu0 %v409_v24  ;;  %604 = vmatprep.subr.mxu1 %v416_v49  ;;  %v626_v24 = vld [vmem:[%s2016_s3 + $0x8] sm:$0xff] }
  0x5f   : > { %537 = vmatprep.subr.mxu0 %v406_v26  ;;  %605 = vmatpush2.msra.mxu1 %v415_v50  ;;  %v625_v26 = vld [vmem:[%s2016_s3] sm:$0xff]  ;;  %v670_v49 = vld [vmem:[%s2016_s3 + $0x168] sm:$0xff] }
  0x60   : > { %538 = vmatpush2.msra.mxu0 %v405_v28  ;;  %606 = vmatprep.subr.mxu1 %v412_v51  ;;  %v455_v28 = vlaneseq  ;;  %v669_v51 = vld [vmem:[%s2016_s3 + $0x160] sm:$0xff] }
  0x61   : > { %539 = vmatprep.subr.mxu0 %v402_v30  ;;  %607 = vmatpush2.msra.mxu1 %v411_v52  ;;  %v668_v52 = vld [vmem:[%s2016_s3 + $0x158] sm:$0xff] }
  0x62   : > { %540 = vmatpush2.msra.mxu0 %v401_v33  ;;  %608 = vmatprep.subr.mxu1 %v408_v53  ;;  %v1661_v29 = vshrl.u32 %v455_v28, 7  ;;  %v667_v53 = vld [vmem:[%s2016_s3 + $0x150] sm:$0xff] }
  0x63   : > { %541 = vmatprep.subr.mxu0 %v398_v35  ;;  %609 = vmatpush2.msra.mxu1 %v407_v54  ;;  %v666_v54 = vld [vmem:[%s2016_s3 + $0x148] sm:$0xff] }
  0x64   : > { %542 = vmatpush2.msra.mxu0 %v397_v37  ;;  %610 = vmatprep.subr.mxu1 %v404_v55  ;;  %v457_v30 = vsub.s32 0, %v1661_v29  ;;  %v461_v33 = vsub.s32 1, %v1661_v29  ;;  %v469_v41 = vsub.s32 3, %v1661_v29  ;;  %v665_v55 = vld [vmem:[%s2016_s3 + $0x140] sm:$0xff] }
  0x65   : > { %544 = vmatmul.mubr.f32.vlgmr.msra.gmra.mxu0 %v1557_v39  ;;  %611 = vmatpush2.msra.mxu1 %v403_v56  ;;  %v664_v56 = vld [vmem:[%s2016_s3 + $0x138] sm:$0xff] }
  0x66   : > { %612 = vmatprep.subr.mxu1 %v400_v57  ;;  %924 = vmatprep.mubr.f32.mxu0 %v1427_v27  ;;  %v458_v34 = vrot.slane %v1667_v32, %v457_v30  ;;  %v462_v35 = vrot.slane %v1667_v32, %v461_v33  ;;  %v470_v44 = vrot.slane %v1667_v32, %v469_v41  ;;  %v663_v57 = vld [vmem:[%s2016_s3 + $0x130] sm:$0xff]  ;;  %v849_v33 = vld [vmem:[%s2018_s5 + $0x28] sm:$0xf] }
  0x67   : > { %613 = vmatpush2.msra.mxu1 %v399_v58  ;;  %1186 = vmatprep.subr.msk.mxu0 %vm853_vm3, %v849_v33 }
  0x68   : > { %615 = vmatmul.mubr.f32.vlgmr.msra.gmra.mxu1 %v1557_v39  ;;  %1197 = vmatprep.subr.mxu1 %v656_v59  ;;  %v662_v59 = vld [vmem:[%s2016_s3 + $0x128] sm:$0xff] }
  0x69   : > { %1198 = vmatpush3.msra.mxu1 %v640_v60  ;;  %v661_v60 = vld [vmem:[%s2016_s3 + $0x120] sm:$0xff] }
  0x6a   : > { %1199 = vmatprep.subr.mxu1 %v655_v61  ;;  %v660_v61 = vld [vmem:[%s2016_s3 + $0x118] sm:$0xff] }
  0x6b   : > { %1200 = vmatpush3.msra.mxu1 %v639_v62  ;;  %v659_v62 = vld [vmem:[%s2016_s3 + $0x110] sm:$0xff] }
  0x6c   : > { %1201 = vmatprep.subr.mxu1 %v654_v63  ;;  %v658_v63 = vld [vmem:[%s2016_s3 + $0x108] sm:$0xff] }
  0x6d   : > { %1202 = vmatpush3.msra.mxu1 %v638_v0  ;;  %v657_v0 = vld [vmem:[%s2016_s3 + $0x100] sm:$0xff] }
  0x6e   : > { %1203 = vmatprep.subr.mxu1 %v653_v1  ;;  %v684_v1 = vld [vmem:[%s2016_s3 + $0x1d8] sm:$0xff] }
  0x6f   : > { %1204 = vmatpush3.msra.mxu1 %v637_v2  ;;  %v465_v2 = vsub.s32 2, %v1661_v29 }
  0x70   : > { %1205 = vmatprep.subr.mxu1 %v652_v3  ;;  %v683_v3 = vld [vmem:[%s2016_s3 + $0x1d0] sm:$0xff] }
  0x71   : > { %1206 = vmatpush3.msra.mxu1 %v636_v4  ;;  %v466_v4 = vrot.slane %v1667_v32, %v465_v2  ;;  %v955_v2 = vld [vmem:[%s2019_s6 + $0xb0] sm:$0xff] }
  0x72   : > { %1207 = vmatprep.subr.mxu1 %v651_v5  ;;  %v682_v5 = vld [vmem:[%s2016_s3 + $0x1c8] sm:$0xff] }
  0x73   : > { %1208 = vmatpush3.msra.mxu1 %v635_v6  ;;  %v681_v6 = vld [vmem:[%s2016_s3 + $0x1c0] sm:$0xff] }
  0x74   : > { %1209 = vmatprep.subr.mxu1 %v650_v7 }
  0x75   : > { %1210 = vmatpush3.msra.mxu1 %v634_v8  ;;  %v680_v8 = vld [vmem:[%s2016_s3 + $0x1b8] sm:$0xff] }
  0x76   : > { %1211 = vmatprep.subr.mxu1 %v649_v9  ;;  %v679_v9 = vld [vmem:[%s2016_s3 + $0x1b0] sm:$0xff] }
  0x77   : > { %1212 = vmatpush3.msra.mxu1 %v633_v10  ;;  %v678_v10 = vld [vmem:[%s2016_s3 + $0x1a8] sm:$0xff] }
  0x78   : > { %1213 = vmatprep.subr.mxu1 %v648_v11  ;;  %v677_v11 = vld [vmem:[%s2016_s3 + $0x1a0] sm:$0xff] }
  0x79   : > { %1214 = vmatpush3.msra.mxu1 %v632_v12  ;;  %v676_v12 = vld [vmem:[%s2016_s3 + $0x198] sm:$0xff] }
  0x7a   : > { %1215 = vmatprep.subr.mxu1 %v647_v13  ;;  %v675_v13 = vld [vmem:[%s2016_s3 + $0x190] sm:$0xff] }
  0x7b   : > { %1216 = vmatpush3.msra.mxu1 %v631_v14  ;;  %v674_v14 = vld [vmem:[%s2016_s3 + $0x188] sm:$0xff] }
  0x7c   : > { %1217 = vmatprep.subr.mxu1 %v646_v15  ;;  %v673_v15 = vld [vmem:[%s2016_s3 + $0x180] sm:$0xff] }
  0x7d   : > { %1218 = vmatpush3.msra.mxu1 %v630_v16 }
  0x7e   : > { %1219 = vmatprep.subr.mxu1 %v645_v17 }
  0x7f   : > { %1220 = vmatpush3.msra.mxu1 %v629_v18 }
  0x80   : > { %1221 = vmatprep.subr.mxu1 %v644_v19 }
  0x81   : > { %1222 = vmatpush3.msra.mxu1 %v628_v20  ;;  %v686_v20 = vstv %s685_s27  ;;  %s2023_s27 = sshll.u32 %s1812_s26, 3 }
  0x82   : > { %1223 = vmatprep.subr.mxu1 %v643_v21  ;;  %s1824_s18 = scalar_lea.vmem [#allocation7], %s2023_s27 }
  0x83   : > { %1224 = vmatpush3.msra.mxu1 %v627_v22  ;;  %s1070_s24 = sshll.u32 %s1824_s18, 4  ;;  %s1071_s24 = int_to_ptr.vmem [resolvable:$true] %s1070_s24 }
  0x84   : > { %1225 = vmatprep.subr.mxu1 %v642_v23  ;;  %s1328_s28 = scalar_lea.vmem %s1071_s24, 128  ;;  %p1335_p11 = scmp.lt.s32.totalorder %s1071_s24, %s1333_s13 }
  0x85   : > { %1226 = vmatpush3.msra.mxu1 %v626_v24  ;;  %p1329_p8 = scmp.ne.s32.totalorder %s1071_s24, %s1328_s28  ;;  %p1336_p12 = scmp.lt.s32.totalorder %s1334_s14, %s1328_s28 }
  0x86   : > { %1227 = vmatprep.subr.mxu1 %v641_v25 }
  0x87   : > { %1228 = vmatpush3.msra.mxu1 %v625_v26  ;;  %p1330_p9 = pnand %p1329_p8, %p1516_p5  ;;  %p1337_p13 = por %p1336_p12, %p1335_p11 }
  0x88   : > { %761 = vmatprep.subr.mxu1 %v1427_v27 }
  0x89   : > { %p1331_p10 = pneg %p1330_p9 }
  0x8b   : > { %p1338_p0 = pnand %p1337_p13, %p1331_p10 }
 0x125   : > { %v545_v36 = vpop.f32.mrf.mxu0 }
 0x126   : > { %v546_v37 = vadd.f32 %v545_v36, %v458_v34  ;;  %v848_v34 = vld [vmem:[%s2018_s5 + $0x20] sm:$0xf]  ;;  %v846_v36 = vld [vmem:[%s2018_s5 + $0x10] sm:$0xff] }
 0x127   : > { %v547_v38 = vpop.f32.mrf.mxu0  ;;  %1187 = vmatpush1.msk.msra.mxu0 %vm853_vm3, %v848_v34 }
 0x128   : > { %v548_v40 = vadd.f32 %v547_v38, %v462_v35  ;;  %v1677_v46 = vpop.f32.mrf.mxu1  ;;  %v847_v35 = vld [vmem:[%s2018_s5 + $0x18] sm:$0xff]  ;;  %v844_v38 = vld [vmem:[%s2018_s5] sm:$0xff] }
 0x129   : > { %v617_v7 = vadd.f32 %v1677_v46, %v466_v4  ;;  %888 = vmatprep.subr.mxu0 %v847_v35  ;;  %v945_v46 = vld [vmem:[%s2019_s6 + $0x60] sm:$0xff] }
 0x12a   : > { %1290 = vtanh.f32 %v548_v40  ;;  %v618_v48 = vpop.f32.mrf.mxu1  ;;  %889 = vmatpush1.msra.mxu0 %v846_v36  ;;  %v953_v4 = vld [vmem:[%s2019_s6 + $0xa0] sm:$0xff] }
 0x12b   : > { %1292 = vtanh.f32 %v546_v37  ;;  %v619_v50 = vadd.f32 %v618_v48, %v470_v44  ;;  %v845_v37 = vld [vmem:[%s2018_s5 + $0x8] sm:$0xff]  ;;  %v947_v44 = vld [vmem:[%s2019_s6 + $0x70] sm:$0xff] }
 0x12c   : > { %890 = vmatprep.subr.mxu0 %v845_v37  ;;  %v943_v48 = vld [vmem:[%s2019_s6 + $0x50] sm:$0xff] }
 0x12d   : > { %1294 = vtanh.f32 %v619_v50  ;;  %891 = vmatpush1.msra.mxu0 %v844_v38  ;;  %v941_v50 = vld [vmem:[%s2019_s6 + $0x40] sm:$0xff] }
 0x12e   : > { %1296 = vtanh.f32 %v617_v7  ;;  %966 = vmatprep.subr.mxu0 %v1427_v27  ;;  %v950_v7 = vld [vmem:[%s2019_s6 + $0x88] sm:$0xff] }
 0x137   : > { %v1291_v42 = vpop.eup %1290 }
 0x138   : > { %v1293_v45 = vpop.eup %1292  ;;  %755 = vmatprep.mubr.f32.mxu1 %v1291_v42 }
 0x139   : > { %756 = vmatmul.mubr.f32.vlgmr.msra.gmra.mxu1 %v1293_v45  ;;  %v946_v45 = vld [vmem:[%s2019_s6 + $0x68] sm:$0xff] }
 0x13a   : > { %762 = vmatpush1.msra.mxu1 %v672_v43  ;;  %v1295_v58 = vpop.eup %1294  ;;  %v948_v43 = vld [vmem:[%s2019_s6 + $0x78] sm:$0xff] }
 0x13b   : > { %763 = vmatprep.subr.mxu1 %v1427_v27  ;;  %1185 = vmatprep.mubr.msk.f32.mxu1 %vm687_vm1, %v1295_v58  ;;  %v1297_v16 = vpop.eup %1296  ;;  %v933_v58 = vld [vmem:[%s2019_s6] sm:$0xff] }
 0x13c   : > { %764 = vmatpush1.msra.mxu1 %v671_v47  ;;  %v944_v47 = vld [vmem:[%s2019_s6 + $0x58] sm:$0xff] }
 0x13d   : > { %765 = vmatprep.subr.mxu1 %v1427_v27 }
 0x13e   : > { %766 = vmatpush1.msra.mxu1 %v670_v49  ;;  %v942_v49 = vld [vmem:[%s2019_s6 + $0x48] sm:$0xff] }
 0x13f   : > { %767 = vmatprep.subr.mxu1 %v1427_v27 }
 0x140   : > { %768 = vmatpush1.msra.mxu1 %v669_v51  ;;  %v940_v51 = vld [vmem:[%s2019_s6 + $0x38] sm:$0xff] }
 0x141   : > { %769 = vmatprep.subr.mxu1 %v1427_v27 }
 0x142   : > { %770 = vmatpush1.msra.mxu1 %v668_v52  ;;  %v939_v52 = vld [vmem:[%s2019_s6 + $0x30] sm:$0xff] }
 0x143   : > { %771 = vmatprep.subr.mxu1 %v1427_v27 }
 0x144   : > { %772 = vmatpush1.msra.mxu1 %v667_v53  ;;  %v938_v53 = vld [vmem:[%s2019_s6 + $0x28] sm:$0xff] }
 0x145   : > { %773 = vmatprep.subr.mxu1 %v1427_v27 }
 0x146   : > { %774 = vmatpush1.msra.mxu1 %v666_v54  ;;  %v937_v54 = vld [vmem:[%s2019_s6 + $0x20] sm:$0xff] }
 0x147   : > { %775 = vmatprep.subr.mxu1 %v1427_v27 }
 0x148   : > { %776 = vmatpush1.msra.mxu1 %v665_v55  ;;  %v936_v55 = vld [vmem:[%s2019_s6 + $0x18] sm:$0xff] }
 0x149   : > { %777 = vmatprep.subr.mxu1 %v1427_v27 }
 0x14a   : > { %778 = vmatpush1.msra.mxu1 %v664_v56  ;;  %v935_v56 = vld [vmem:[%s2019_s6 + $0x10] sm:$0xff] }
 0x14b   : > { %779 = vmatprep.subr.mxu1 %v1427_v27 }
 0x14c   : > { %780 = vmatpush1.msra.mxu1 %v663_v57  ;;  %v934_v57 = vld [vmem:[%s2019_s6 + $0x8] sm:$0xff] }
 0x14d   : > { %781 = vmatprep.subr.mxu1 %v1427_v27 }
 0x14e   : > { %782 = vmatpush1.msra.mxu1 %v662_v59  ;;  %v962_v59 = vld [vmem:[%s2019_s6 + $0xe8] sm:$0xff] }
 0x14f   : > { %783 = vmatprep.subr.mxu1 %v1427_v27 }
 0x150   : > { %784 = vmatpush1.msra.mxu1 %v661_v60  ;;  %v961_v60 = vld [vmem:[%s2019_s6 + $0xe0] sm:$0xff] }
 0x151   : > { %785 = vmatprep.subr.mxu1 %v1427_v27 }
 0x152   : > { %786 = vmatpush1.msra.mxu1 %v660_v61  ;;  %v960_v61 = vld [vmem:[%s2019_s6 + $0xd8] sm:$0xff] }
 0x153   : > { %787 = vmatprep.subr.mxu1 %v1427_v27 }
 0x154   : > { %788 = vmatpush1.msra.mxu1 %v659_v62  ;;  %v959_v62 = vld [vmem:[%s2019_s6 + $0xd0] sm:$0xff] }
 0x155   : > { %789 = vmatprep.subr.mxu1 %v1427_v27 }
 0x156   : > { %790 = vmatpush1.msra.mxu1 %v658_v63  ;;  %v958_v63 = vld [vmem:[%s2019_s6 + $0xc8] sm:$0xff] }
 0x157   : > { %791 = vmatprep.subr.mxu1 %v1427_v27 }
 0x158   : > { %792 = vmatpush1.msra.mxu1 %v657_v0  ;;  %v957_v0 = vld [vmem:[%s2019_s6 + $0xc0] sm:$0xff] }
 0x159   : > { %801 = vmatprep.subr.mxu1 %v1427_v27 }
 0x15a   : > { %802 = vmatpush2.msra.mxu1 %v684_v1  ;;  %v956_v1 = vld [vmem:[%s2019_s6 + $0xb8] sm:$0xff] }
 0x15b   : > { %803 = vmatprep.subr.mxu1 %v1427_v27 }
 0x15c   : > { %804 = vmatpush2.msra.mxu1 %v683_v3  ;;  %v954_v3 = vld [vmem:[%s2019_s6 + $0xa8] sm:$0xff] }
 0x15d   : > { %805 = vmatprep.subr.mxu1 %v1427_v27 }
 0x15e   : > { %806 = vmatpush2.msra.mxu1 %v682_v5  ;;  %v952_v5 = vld [vmem:[%s2019_s6 + $0x98] sm:$0xff] }
 0x15f   : > { %807 = vmatprep.subr.mxu1 %v1427_v27 }
 0x160   : > { %808 = vmatpush2.msra.mxu1 %v681_v6  ;;  %v951_v6 = vld [vmem:[%s2019_s6 + $0x90] sm:$0xff] }
 0x161   : > { %809 = vmatprep.subr.mxu1 %v1427_v27 }
 0x162   : > { %810 = vmatpush2.msra.mxu1 %v680_v8  ;;  %v949_v8 = vld [vmem:[%s2019_s6 + $0x80] sm:$0xff] }
 0x163   : > { %811 = vmatprep.subr.mxu1 %v1427_v27 }
 0x164   : > { %812 = vmatpush2.msra.mxu1 %v679_v9 }
 0x165   : > { %813 = vmatprep.subr.mxu1 %v1427_v27 }
 0x166   : > { %814 = vmatpush2.msra.mxu1 %v678_v10 }
 0x167   : > { %815 = vmatprep.subr.mxu1 %v1427_v27 }
 0x168   : > { %816 = vmatpush2.msra.mxu1 %v677_v11 }
 0x169   : > { %817 = vmatprep.subr.mxu1 %v1427_v27 }
 0x16a   : > { %818 = vmatpush2.msra.mxu1 %v676_v12 }
 0x16b   : > { %819 = vmatprep.subr.mxu1 %v1427_v27 }
 0x16c   : > { %820 = vmatpush2.msra.mxu1 %v675_v13 }
 0x16d   : > { %821 = vmatprep.subr.mxu1 %v1427_v27 }
 0x16e   : > { %822 = vmatpush2.msra.mxu1 %v674_v14 }
 0x16f   : > { %823 = vmatprep.subr.mxu1 %v1427_v27 }
 0x170   : > { %824 = vmatpush2.msra.mxu1 %v673_v15 }
 0x171   : > { %826 = vmatmul.mubr.f32.vlgmr.msra.gmra.mxu1 %v1297_v16 }
 0x1f9   : > { %v1229_v17 = vpop.f32.mrf.mxu1 }
 0x1fb   : > { %v1230_v18 = vpop.f32.mrf.mxu1 }
 0x1fc   : > { %v1231_v19 = vadd.f32 %v1230_v18, %v1229_v17 }
 0x1fe   : > { %v758_v21 = vadd.f32 %v1231_v19, %v686_v20 }
 0x231   : > { %v827_v22 = vpop.f32.mrf.mxu1 }
 0x232   : > { %v828_v23 = vadd.f32 %v827_v22, %v758_v21 }
 0x233   : > { %v829_v24 = vpop.f32.mrf.mxu1 }
 0x234   : > { %v832_v25 = vsel %vm831_vm2, %v828_v23, -inf }
 0x235   : > { %833 = vmax.xlane.f32.xlu0 %v832_v25 }
 0x2be   : > { %v834_v26 = vpop.xlane.xlu0 %833 }
 0x2bf   : > { %v835_v28 = vsub.f32 %v828_v23, %v834_v26 }
 0x2c1   : > { %v836_v29 = vmul.f32 1.442695, %v835_v28 }
 0x2c3   : > { %1298 = vpow2.f32 %v836_v29 }
 0x2d0   : > { %v1299_v30 = vpop.eup %1298 }
 0x2d1   : > { %v838_v32 = vsel %vm831_vm2, %v1299_v30, 0.0 }
 0x2d2   : > { %839 = vadd.xlane.f32.xlu0 %v838_v32 }
 0x35b   : > { %v840_v40 = vpop.xlane.xlu0 %839 }
 0x35c   : > { %1300 = vrcp.f32 %v840_v40 }
 0x369   : > { %v1301_v41 = vpop.eup %1300 }
 0x36a   : > { %v842_v42 = vmul.f32 %v1301_v41, %v1299_v30 }
 0x36c   : > { %1188 = vmatmul.mubr.msk.f32.vlgmr.msra.gmra.mxu0 %vm831_vm2, %v842_v42  ;;  %843 = vst.msk [vmem:[%s1824_s18] sm:$0xff] %vm831_vm2, %v842_v42 }
 0x36d   : > { %967 = vmatpush1.msra.mxu0 %v948_v43 }
 0x36e   : > { %968 = vmatprep.subr.mxu0 %v1427_v27 }
 0x36f   : > { %969 = vmatpush1.msra.mxu0 %v947_v44 }
 0x370   : > { %970 = vmatprep.subr.mxu0 %v1427_v27 }
 0x371   : > { %971 = vmatpush1.msra.mxu0 %v946_v45 }
 0x372   : > { %972 = vmatprep.subr.mxu0 %v1427_v27 }
 0x373   : > { %973 = vmatpush1.msra.mxu0 %v945_v46 }
 0x374   : > { %974 = vmatprep.subr.mxu0 %v1427_v27 }
 0x375   : > { %975 = vmatpush1.msra.mxu0 %v944_v47 }
 0x376   : > { %976 = vmatprep.subr.mxu0 %v1427_v27 }
 0x377   : > { %977 = vmatpush1.msra.mxu0 %v943_v48 }
 0x378   : > { %978 = vmatprep.subr.mxu0 %v1427_v27 }
 0x379   : > { %979 = vmatpush1.msra.mxu0 %v942_v49 }
 0x37a   : > { %980 = vmatprep.subr.mxu0 %v1427_v27 }
 0x37b   : > { %981 = vmatpush1.msra.mxu0 %v941_v50 }
 0x37c   : > { %982 = vmatprep.subr.mxu0 %v1427_v27 }
 0x37d   : > { %983 = vmatpush1.msra.mxu0 %v940_v51 }
 0x37e   : > { %984 = vmatprep.subr.mxu0 %v1427_v27 }
 0x37f   : > { %985 = vmatpush1.msra.mxu0 %v939_v52 }
 0x380   : > { %986 = vmatprep.subr.mxu0 %v1427_v27 }
 0x381   : > { %987 = vmatpush1.msra.mxu0 %v938_v53 }
 0x382   : > { %988 = vmatprep.subr.mxu0 %v1427_v27 }
 0x383   : > { %989 = vmatpush1.msra.mxu0 %v937_v54 }
 0x384   : > { %990 = vmatprep.subr.mxu0 %v1427_v27 }
 0x385   : > { %991 = vmatpush1.msra.mxu0 %v936_v55 }
 0x386   : > { %992 = vmatprep.subr.mxu0 %v1427_v27 }
 0x387   : > { %993 = vmatpush1.msra.mxu0 %v935_v56 }
 0x388   : > { %994 = vmatprep.subr.mxu0 %v1427_v27 }
 0x389   : > { %995 = vmatpush1.msra.mxu0 %v934_v57 }
 0x38a   : > { %996 = vmatprep.subr.mxu0 %v1427_v27 }
 0x38b   : > { %997 = vmatpush1.msra.mxu0 %v933_v58 }
 0x38c   : > { %1002 = vmatprep.subr.mxu0 %v1427_v27 }
 0x38d   : > { %1003 = vmatpush2.msra.mxu0 %v962_v59 }
 0x38e   : > { %1004 = vmatprep.subr.mxu0 %v1427_v27 }
 0x38f   : > { %1005 = vmatpush2.msra.mxu0 %v961_v60 }
 0x390   : > { %1006 = vmatprep.subr.mxu0 %v1427_v27 }
 0x391   : > { %1007 = vmatpush2.msra.mxu0 %v960_v61 }
 0x392   : > { %1008 = vmatprep.subr.mxu0 %v1427_v27 }
 0x393   : > { %1009 = vmatpush2.msra.mxu0 %v959_v62 }
 0x394   : > { %1010 = vmatprep.subr.mxu0 %v1427_v27 }
 0x395   : > { %1011 = vmatpush2.msra.mxu0 %v958_v63 }
 0x396   : > { %1012 = vmatprep.subr.mxu0 %v1427_v27 }
 0x397   : > { %1013 = vmatpush2.msra.mxu0 %v957_v0 }
 0x398   : > { %1014 = vmatprep.subr.mxu0 %v1427_v27 }
 0x399   : > { %1015 = vmatpush2.msra.mxu0 %v956_v1 }
 0x39a   : > { %1016 = vmatprep.subr.mxu0 %v1427_v27 }
 0x39b   : > { %1017 = vmatpush2.msra.mxu0 %v955_v2 }
 0x39c   : > { %1018 = vmatprep.subr.mxu0 %v1427_v27 }
 0x39d   : > { %1019 = vmatpush2.msra.mxu0 %v954_v3 }
 0x39e   : > { %1020 = vmatprep.subr.mxu0 %v1427_v27 }
 0x39f   : > { %1021 = vmatpush2.msra.mxu0 %v953_v4 }
 0x3a0   : > { %1022 = vmatprep.subr.mxu0 %v1427_v27 }
 0x3a1   : > { %1023 = vmatpush2.msra.mxu0 %v952_v5 }
 0x3a2   : > { %1024 = vmatprep.subr.mxu0 %v1427_v27 }
 0x3a3   : > { %1025 = vmatpush2.msra.mxu0 %v951_v6 }
 0x3a4   : > { %1026 = vmatprep.subr.mxu0 %v1427_v27 }
 0x3a5   : > { %1027 = vmatpush2.msra.mxu0 %v950_v7 }
 0x3a6   : > { %1028 = vmatprep.subr.mxu0 %v1427_v27 }
 0x3a7   : > { %1029 = vmatpush2.msra.mxu0 %v949_v8 }
 0x42c   : > { %v926_v9 = vpop.f32.mrf.mxu0 }
 0x42d   : > { %v931_v12 = vmul.f32 %v926_v9, %v1557_v39 }
 0x42e   : > { %v928_v10 = vpop.f32.mrf.mxu0 }
 0x42f   : > { %v932_v11 = vmul.f32 %v928_v10, %v1552_v31 }
 0x431   : > { %1189 = vmatprep.mubr.msk.f32.mxu0 %vm475_vm0, %v932_v11 }
 0x432   : > { %1031 = vmatmul.mubr.f32.vlgmr.msra.gmra.mxu0 %v931_v12 }
 0x433   : > { %1341 = shalt.err (!%p1338_p0)
}
 0x434   : > { %s1342_s19 = scalar_lea.hbm %s1068_s23, 128  ;;  %s1346_s22 = scalar_lea.hbm %s2021_s8, 256 }
 0x435   : > { %p1343_p1 = scmp.ne.s32.totalorder %s1068_s23, %s1342_s19  ;;  %p1347_p4 = scmp.lt.s32.totalorder %s1068_s23, %s2021_s8 }
 0x436   : > { %p1348_p7 = scmp.lt.s32.totalorder %s1346_s22, %s1342_s19 }
 0x437   : > { %p1344_p2 = pnand %p1343_p1, %p1516_p5 }
 0x438   : > { %p1349_p6 = por %p1348_p7, %p1347_p4 }
 0x439   : > { %p1345_p3 = pneg %p1344_p2 }
 0x43b   : > { %p1350_p8 = pnand %p1349_p6, %p1345_p3 }
 0x43d   : > { %1353 = shalt.err (!%p1350_p8)
}
 0x43e   : > { %1237 = dma.vmem_to_hbm [thread:$0]  (%p1516_p5), %s1071_s24, 128, %s1068_s23, %s1044_s25   ;;  %vm1036_vm4 = vcmask 97280  }
 0x43f   : > { %s2027_s28 = sshll.u32 %s1812_s26, 3  ;;  %s2028_s14 = sshll.u32 %s1499_s4, 7 }
 0x440   : > { %s318_s11 = scalar_lea.vmem [#allocation6], %s2027_s28  ;;  %s1971_s27 = scalar_lea.hbm %s2020_s7, %s2028_s14 }
 0x441   : > { %s1057_s13 = sshll.u32 %s318_s11, 4  ;;  %s1039_s20 = scalar_lea.sflag [#allocation5], %s1812_s26  ;;  %s1973_s13 = int_to_ptr.vmem [resolvable:$true] %s1057_s13 }
 0x442   : > { %s1354_s23 = scalar_lea.vmem %s1973_s13, 128  ;;  %s1429_s4 = smov [#allocation6]  }
 0x443   : > { %p1355_p9 = scmp.ne.s32.totalorder %s1973_s13, %s1354_s23  ;;  %s1358_s24 = sshll.u32 %s1429_s4, 4  ;;  %s1359_s24 = int_to_ptr.vmem [resolvable:$false] %s1358_s24 }
 0x444   : > { %s1360_s25 = scalar_lea.vmem %s1359_s24, 256  ;;  %p1361_p12 = scmp.lt.s32.totalorder %s1973_s13, %s1359_s24 }
 0x445   : > { %p1356_p10 = pnand %p1355_p9, %p1516_p5  ;;  %p1362_p13 = scmp.lt.s32.totalorder %s1360_s25, %s1354_s23 }
 0x447   : > { %p1357_p11 = pneg %p1356_p10  ;;  %p1363_p0 = por %p1362_p13, %p1361_p12 }
 0x449   : > { %p1364_p1 = pnand %p1363_p0, %p1357_p11 }
 0x4f2   : > { %v1032_v31 = vpop.f32.mrf.mxu0 }
 0x4f3   : > { %1037 = vst.msk [vmem:[%s318_s11] sm:$0xff] %vm1036_vm4, %v1032_v31 }
 0x4f4   : > { %v1034_v39 = vpop.f32.mrf.mxu0 }
 0x4f5   : > { %1367 = shalt.err (!%p1364_p1)
}
 0x4f6   : > { %s1368_s19 = scalar_lea.hbm %s1971_s27, 128  ;;  %s1372_s28 = scalar_lea.hbm %s2020_s7, 256 }
 0x4f7   : > { %p1369_p2 = scmp.ne.s32.totalorder %s1971_s27, %s1368_s19  ;;  %p1373_p7 = scmp.lt.s32.totalorder %s1971_s27, %s2020_s7 }
 0x4f8   : > { %p1374_p6 = scmp.lt.s32.totalorder %s1372_s28, %s1368_s19 }
 0x4f9   : > { %p1370_p3 = pnand %p1369_p2, %p1516_p5 }
 0x4fa   : > { %p1375_p8 = por %p1374_p6, %p1373_p7 }
 0x4fb   : > { %p1371_p4 = pneg %p1370_p3 }
 0x4fd   : > { %p1376_p9 = pnand %p1375_p8, %p1371_p4 }
 0x4ff   : > { %1379 = shalt.err (!%p1376_p9)
}
 0x500   : > { %1236 = dma.vmem_to_hbm [thread:$0]  (%p1516_p5), %s1973_s13, 128, %s1971_s27, %s1039_s20  }
 0x501 PF: > { %p1253_p10 = scmp.ge.s32.totalorder %s1422_s10, 2  ;;  %s1082_s18 = sand.u32 1, %s1410_s29  }
 0x502   : > { %p2029_p11 = scmp.ne.s32.totalorder %s2025_s17, 0  ;;  %s1083_s21 = scalar_lea.sflag [#allocation5], %s1082_s18 }
 0x504   : > { %p1245_p12 = pnand %p1253_p10, %p2029_p11 }
 0x506   : > { %p1246_p13 = pneg %p1245_p12 }
 0x508   : > { %1401 = dma.done.wait (%p1246_p13), %s1083_s21, 128  }
 0x509   : > { %1403 = vsyncadd (%p1246_p13), %s1083_s21, 4294967168  ;;  %s1092_s23 = scalar_lea.sflag [#allocation8], %s1082_s18 }
 0x50a   : > { %1405 = dma.done.wait (%p1246_p13), %s1092_s23, 128  }
 0x50b   : > { %1407 = vsyncadd (%p1246_p13), %s1092_s23, 4294967168  ;;  %p24_p5 = scmp.ge.s32.totalorder %s1503_s12, 4   ;;  %s2030_s29 = smov %s1414_s30 }
 0x50c   : > { %s2031_s30 = smov %s1418_s9  ;;  %s2032_s9 = smov %s1514_s15 }
 0x50d   : > { %s2033_s10 = smov %s1503_s12  ;;  %26 = sbr.rel (!%p24_p5) target bundleno = 8 (0x8), region = 105 }
 0x512   :  { %1097 = vsyncpa [#allocation4], 1 }
 0x513   :  { %1099 = vsyncpa [#allocation4 + $0x1], 1 }
 0x514   :  { %1100 = vsyncpa [#allocation5], 1 }
 0x515   :  { %1102 = vsyncpa [#allocation5 + $0x1], 1 }
 0x516   :  { %1103 = vsyncpa [#allocation8], 1 }
 0x517   :  { %1105 = vsyncpa [#allocation8 + $0x1], 1 }

</bundles_post_ra>
